<compile_context>
chip_gen: v5e
topology: v5e:2x2
jax: 0.10.0
libtpu: 0.0.40
codegen_flags: <defaults>
</compile_context>

<pallas_src>
import math

import jax
import jax.numpy as jnp
from jax.experimental import pallas as pl
from jax.experimental.pallas import tpu as pltpu

EIGS_NUM = 3  # SpectPool.eigs_num


# --------------------------------------------------------------------------------------
# Generation-aware sizing
# --------------------------------------------------------------------------------------
def _vmem_limit_bytes():
    """~3/4 of physical VMEM: 48 MiB on v7x (64 MiB parts), 96 MiB on v5e/v6e (128 MiB)."""
    cap = 64 * 1024 * 1024
    try:
        cap = int(getattr(pltpu.get_tpu_info(), "vmem_capacity_bytes", cap))
    except Exception:
        pass
    return (3 * cap) // 4


def _compiler_params(semantics=None, vmem_limit=None):
    return pltpu.CompilerParams(
        dimension_semantics=semantics,
        vmem_limit_bytes=vmem_limit,
    )


def _pick_row_tile(n_rows, n_cols, feat, vmem_limit):
    """VMEM-budget-aware row tile for the mem-bound Laplacian pass.

    Per grid step K1 holds (double-buffered) an A tile, an L tile and a Z tile:
    ~16*tm*n_cols + 8*tm*feat bytes.  Pick the largest multiple-of-8 tm that fits the
    budget, capped so the grid keeps >= 4 steps (pipelining + v7x megacore sharding).
    """
    per_row = 16 * n_cols + 8 * feat + 64
    cap = max(8, int(vmem_limit * 0.9) // per_row)
    tm = min(1024, cap)
    quarter = -(-n_rows // 4)                        # ceil(n_rows / 4)
    tm = min(tm, max(8, ((quarter + 7) // 8) * 8))   # keep >= 4 grid steps when possible
    tm = max(8, (tm // 8) * 8)
    return tm


# --------------------------------------------------------------------------------------
# Kernel 1: fused normalized-Laplacian build + (folded) feature projection.
#   L[i, j] = (i == j) * [deg_i > 0]  -  dinv_i * A[i, j] * dinv_j
#   fw[i]   = Z[i, :] . (alpha * W_feat)          (final_proj weight alpha pre-folded)
# --------------------------------------------------------------------------------------
def _lap_feat_kernel(a_ref, dr_ref, dc_ref, z_ref, wf_ref, l_ref, fw_ref):
    i = pl.program_id(0)
    tm, ncols = a_ref.shape
    a = a_ref[...]
    dr = dr_ref[...]                                    # [tm, 1]  D^-1/2 rows of this tile
    dc = dc_ref[...]                                    # [1, n]   D^-1/2 all columns
    row = jax.lax.broadcasted_iota(jnp.int32, (tm, ncols), 0) + i * tm
    col = jax.lax.broadcasted_iota(jnp.int32, (tm, ncols), 1)
    eye = jnp.where(row == col, 1.0, 0.0)
    has_deg = (dr > 0.0).astype(jnp.float32)            # isolated nodes -> zero row
    l_ref[...] = eye * has_deg - dr * a * dc
    # folded feature projection (VPU mul + lane reduce; no degenerate 1-lane matmul)
    fw_ref[...] = jnp.sum(z_ref[...] * wf_ref[...], axis=1, keepdims=True)


def laplacian_and_feature_proj(a, dinv, z, wf_fold, *, tm, vmem_limit):
    n = a.shape[0]
    f = z.shape[1]
    dr = dinv.reshape(n, 1)
    dc = dinv.reshape(1, n)
    wf = wf_fold.reshape(1, f)
    grid = (pl.cdiv(n, tm),)   # ragged last tile OK: OOB reads unused, OOB writes dropped
    return pl.pallas_call(
        _lap_feat_kernel,
        out_shape=(
            jax.ShapeDtypeStruct((n, n), jnp.float32),
            jax.ShapeDtypeStruct((n, 1), jnp.float32),
        ),
        grid=grid,
        in_specs=[
            pl.BlockSpec((tm, n), lambda i: (i, 0)),
            pl.BlockSpec((tm, 1), lambda i: (i, 0)),
            pl.BlockSpec((1, n), lambda i: (0, 0)),
            pl.BlockSpec((tm, f), lambda i: (i, 0)),
            pl.BlockSpec((1, f), lambda i: (0, 0)),
        ],
        out_specs=[
            pl.BlockSpec((tm, n), lambda i: (i, 0)),
            pl.BlockSpec((tm, 1), lambda i: (i, 0)),
        ],
        compiler_params=_compiler_params(("parallel",), vmem_limit),
    )(a, dr, dc, z, wf)


# --------------------------------------------------------------------------------------
# Kernel 2: fused structure projection + final projection + sigmoid (single tiny block).
#   scores = sigmoid(fw + L_a @ (beta * W_struct)^T + folded_bias)
# --------------------------------------------------------------------------------------
def _score_kernel(fw_ref, la_ref, ws_ref, b_ref, s_ref):
    sw = jnp.sum(la_ref[...] * ws_ref[...], axis=1, keepdims=True)
    w = fw_ref[...] + sw + b_ref[...]
    # sigmoid via EUP exp + EUP approximate reciprocal (no VPU divide sequence)
    s_ref[...] = pl.reciprocal(1.0 + jnp.exp(-w), approx=True)


def fused_scores(fw, la, ws_fold, b_fold, *, vmem_limit):
    n = fw.shape[0]
    e = la.shape[1]
    ws = ws_fold.reshape(1, e)
    b = jnp.asarray(b_fold, jnp.float32).reshape(1, 1)
    # Total data is ~N*20 bytes: one block, no grid (tiling was pure launch overhead).
    return pl.pallas_call(
        _score_kernel,
        out_shape=jax.ShapeDtypeStruct((n, 1), jnp.float32),
        compiler_params=_compiler_params(None, vmem_limit),
    )(fw, la, ws, b)


# --------------------------------------------------------------------------------------
# Kernel 3: top-k pooling as an Element row-gather grid (grid=(k,)).
#   h_pool[i, :] = h[idx[i], :] * scores[idx[i]]
#   g[i, :]      = A[idx[i], idx[:]]     (column selection fused via one-hot MXU matmul)
# --------------------------------------------------------------------------------------
def _pool_fused_kernel(idx_ref, val_ref, h_ref, a_ref, sel_ref, hp_ref, g_ref):
    i = pl.program_id(0)
    s = val_ref[i]                                     # top-k score value (SMEM scalar)
    hp_ref[...] = (h_ref[...] * s).reshape(hp_ref.shape)
    g_row = jnp.dot(a_ref[...], sel_ref[...], preferred_element_type=jnp.float32)
    g_ref[...] = g_row.reshape(g_ref.shape)


def _pool_rows_kernel(idx_ref, val_ref, h_ref, a_ref, hp_ref, ar_ref):
    i = pl.program_id(0)
    s = val_ref[i]
    hp_ref[...] = (h_ref[...] * s).reshape(hp_ref.shape)
    ar_ref[...] = a_ref[...].reshape(ar_ref.shape)


def topk_pool_gather(idx, vals, h, a, k, *, vmem_limit):
    """Scalar-prefetched indices drive per-row Element DMAs (auto double-buffered)."""
    n, f = h.shape
    # Fuse the pooled-adjacency column gather when the (n, k) one-hot selector fits
    # comfortably in VMEM; otherwise fall back to emitting rows + host column gather.
    fuse_cols = n * k * 4 <= 8 * 1024 * 1024

    gathered_in_specs = [
        pl.BlockSpec((pl.Element(1), f), lambda i, idx_ref, val_ref: (idx_ref[i], 0)),
        pl.BlockSpec((pl.Element(1), n), lambda i, idx_ref, val_ref: (idx_ref[i], 0)),
    ]
    hp_spec = pl.BlockSpec((1, 1, f), lambda i, idx_ref, val_ref: (i, 0, 0))

    if fuse_cols:
        sel = (jnp.arange(n, dtype=jnp.int32)[:, None] == idx[None, :]).astype(jnp.float32)
        grid_spec = pltpu.PrefetchScalarGridSpec(
            num_scalar_prefetch=2,
            grid=(k,),
            in_specs=gathered_in_specs
            + [pl.BlockSpec((n, k), lambda i, idx_ref, val_ref: (0, 0))],
            out_specs=[
                hp_spec,
                pl.BlockSpec((1, 1, k), lambda i, idx_ref, val_ref: (i, 0, 0)),
            ],
        )
        h_pool, g = pl.pallas_call(
            _pool_fused_kernel,
            out_shape=(
                jax.ShapeDtypeStruct((k, 1, f), jnp.float32),
                jax.ShapeDtypeStruct((k, 1, k), jnp.float32),
            ),
            grid_spec=grid_spec,
            compiler_params=_compiler_params(("arbitrary",), vmem_limit),
        )(idx, vals, h, a, sel)
        return h_pool.reshape(k, f), g.reshape(k, k)

    grid_spec = pltpu.PrefetchScalarGridSpec(
        num_scalar_prefetch=2,
        grid=(k,),
        in_specs=gathered_in_specs,
        out_specs=[
            hp_spec,
            pl.BlockSpec((1, 1, n), lambda i, idx_ref, val_ref: (i, 0, 0)),
        ],
    )
    h_pool, a_rows = pl.pallas_call(
        _pool_rows_kernel,
        out_shape=(
            jax.ShapeDtypeStruct((k, 1, f), jnp.float32),
            jax.ShapeDtypeStruct((k, 1, n), jnp.float32),
        ),
        grid_spec=grid_spec,
        compiler_params=_compiler_params(("arbitrary",), vmem_limit),
    )(idx, vals, h, a)
    # TODO(synk): very large n*k fallback keeps the column gather as XLA glue.
    g = jnp.take(a_rows.reshape(k, n), idx, axis=1)
    return h_pool.reshape(k, f), g


# --------------------------------------------------------------------------------------
# Host-side glue + parameter folding
# --------------------------------------------------------------------------------------
def build_undirected_adjacency(edge_index, num_nodes):
    """Dense simple-graph adjacency (networkx.Graph semantics: undirected, 0/1 entries)."""
    src, dst = edge_index[0], edge_index[1]
    a = jnp.zeros((num_nodes, num_nodes), jnp.float32)
    a = a.at[src, dst].set(1.0)
    a = a.at[dst, src].set(1.0)
    return a


def init_linear(key, f_in, f_out):
    """Deterministic nn.Linear-style init: U(-1/sqrt(f_in), 1/sqrt(f_in))."""
    kw, kb = jax.random.split(key)
    bound = 1.0 / math.sqrt(f_in)
    w = jax.random.uniform(kw, (f_out, f_in), jnp.float32, -bound, bound)
    b = jax.random.uniform(kb, (f_out,), jnp.float32, -bound, bound)
    return w, b


def init_spect_pool_params(key, in_dim):
    """Init feature_proj / structure_proj / final_proj and fold them once (host-side)."""
    k1, k2, k3 = jax.random.split(key, 3)
    w_feat, b_feat = init_linear(k1, in_dim, 1)         # feature_proj:   Linear(in_dim, 1)
    w_struct, b_struct = init_linear(k2, EIGS_NUM, 1)   # structure_proj: Linear(3, 1)
    w_final, b_final = init_linear(k3, 2, 1)            # final_proj:     Linear(2, 1)
    alpha, beta = w_final[0, 0], w_final[0, 1]
    wf_fold = alpha * w_feat[0]                          # [in_dim]
    ws_fold = beta * w_struct[0]                         # [EIGS_NUM]
    b_fold = alpha * b_feat[0] + beta * b_struct[0] + b_final[0]
    return wf_fold, ws_fold, b_fold


def spect_pool_forward(edge_index, h, params, *, ratio, p=0.0):
    n, f = h.shape
    wf_fold, ws_fold, b_fold = params
    vmem_limit = _vmem_limit_bytes()

    # Dropout: Identity branch (p == 0), matching the module's eval/identity path.
    # TODO(synk): training-mode Dropout(p>0) would use pltpu.prng_random_bits inside K1.
    z = h

    # Glue: dense adjacency (scatter build has no clean Pallas equivalent).
    a = build_undirected_adjacency(edge_index, n)

    # Degrees via O(E) scatter-add on the edge list (avoids an extra N^2 HBM row-sum pass).
    # NOTE: assumes standard PyG-style edge_index (each undirected edge listed in both
    # directions, no duplicate directed edges) == networkx simple-graph degrees.
    deg = jnp.zeros((n,), jnp.float32).at[edge_index[0]].add(1.0)
    dinv = jnp.where(deg > 0.0, 1.0 / jnp.sqrt(jnp.maximum(deg, 1e-12)), 0.0)

    tm = _pick_row_tile(n, n, f, vmem_limit)

    # K1: fused normalized Laplacian + folded feature projection (row-tiled, parallel).
    lap, fw = laplacian_and_feature_proj(a, dinv, z, wf_fold, tm=tm, vmem_limit=vmem_limit)

    # Glue: approximate_matrix == spectral embedding (3 lowest-eigenvalue eigenvectors).
    # TODO(synk): eigendecomposition has no Pallas equivalent; jnp.linalg.eigh as XLA glue.
    _, evecs = jnp.linalg.eigh(lap)
    la = evecs[:, :EIGS_NUM]

    # K2: fused structure/final projection + sigmoid.
    scores = fused_scores(fw, la, ws_fold, b_fold, vmem_limit=vmem_limit)[:, 0]

    # Glue: top-k node selection (sort has no clean Pallas equivalent).
    k = max(1, int(math.ceil(ratio * n)))
    vals, idx = jax.lax.top_k(scores, k)
    idx = idx.astype(jnp.int32)

    # K3: Element row-gather grid: gate the selected h rows, build pooled adjacency.
    # TODO(synk): top_k_pool is undefined in the source; standard gPool/SAGPool semantics used.
    h_pool, g = topk_pool_gather(idx, vals, h, a, k, vmem_limit=vmem_limit)

    # Replicated literally from the reference (node indices slicing edge columns).
    # NOTE: if k > E, JAX clamps indices silently — faithful to the source, flagged.
    edge_index_new = edge_index[:, idx]
    return g, h_pool, idx, edge_index_new


if __name__ == "__main__":
    num_nodes = 32
    in_dim = 16
    ratio = 0.5
    p = 0.0  # Dropout prob; p == 0 -> nn.Identity branch of the module

    key = jax.random.PRNGKey(0)
    k_h, k_params = jax.random.split(key)

    # Node features [N, in_dim]
    h = jax.random.normal(k_h, (num_nodes, in_dim), dtype=jnp.float32)

    # Deterministic edge_index [2, E]: bidirectional ring graph
    node_ids = jnp.arange(num_nodes, dtype=jnp.int32)
    nxt = (node_ids + 1) % num_nodes
    edge_index = jnp.stack(
        [jnp.concatenate([node_ids, nxt]), jnp.concatenate([nxt, node_ids])], axis=0
    )

    params = init_spect_pool_params(k_params, in_dim)

    g, h_pool, keep_idx, edge_index_new = spect_pool_forward(
        edge_index, h, params, ratio=ratio, p=p
    )
    jax.block_until_ready((g, h_pool, keep_idx, edge_index_new))

    k = max(1, int(math.ceil(ratio * num_nodes)))
    assert g.shape == (k, k)
    assert h_pool.shape == (k, in_dim)
    assert keep_idx.shape == (k,)
    assert edge_index_new.shape == (2, k)
    assert bool(jnp.all(jnp.isfinite(g)))
    assert bool(jnp.all(jnp.isfinite(h_pool)))
    assert bool(jnp.all((g == 0.0) | (g == 1.0)))  # pooled adjacency is 0/1

    print("KERNEL_OK")
</pallas_src>

<mosaic_0001>
module attributes {stable_mosaic.version = 11 : i64} {
  func.func @_lap_feat_kernel(%arg0: i32, %arg1: memref<8x32xf32, #tpu.memory_space<vmem>>, %arg2: memref<8x1xf32, #tpu.memory_space<vmem>>, %arg3: memref<1x32xf32, #tpu.memory_space<vmem>>, %arg4: memref<8x16xf32, #tpu.memory_space<vmem>>, %arg5: memref<1x16xf32, #tpu.memory_space<vmem>>, %arg6: memref<8x32xf32, #tpu.memory_space<vmem>>, %arg7: memref<8x1xf32, #tpu.memory_space<vmem>>) attributes {dimension_semantics = [#tpu.dimension_semantics<parallel>], iteration_bounds = array<i64: 4>, scalar_prefetch = 0 : i64, scratch_operands = 0 : i64, tpu.core_type = #tpu.core_type<tc>, window_params = [{transform_indices = @transform_0, window_bounds = array<i64: 8, 32>}, {transform_indices = @transform_1, window_bounds = array<i64: 8, 1>}, {pipeline_mode = #tpu.pipeline_mode<synchronous>, transform_indices = @transform_2, window_bounds = array<i64: 1, 32>}, {transform_indices = @transform_3, window_bounds = array<i64: 8, 16>}, {pipeline_mode = #tpu.pipeline_mode<synchronous>, transform_indices = @transform_4, window_bounds = array<i64: 1, 16>}, {transform_indices = @transform_5, window_bounds = array<i64: 8, 32>}, {transform_indices = @transform_6, window_bounds = array<i64: 8, 1>}]} {
    %c0 = arith.constant 0 : index
    %c0_0 = arith.constant 0 : index
    %0 = vector.load %arg1[%c0, %c0_0] : memref<8x32xf32, #tpu.memory_space<vmem>>, vector<8x32xf32>
    %c0_1 = arith.constant 0 : index
    %c0_2 = arith.constant 0 : index
    %1 = vector.load %arg2[%c0_1, %c0_2] : memref<8x1xf32, #tpu.memory_space<vmem>>, vector<8x1xf32>
    %c0_3 = arith.constant 0 : index
    %c0_4 = arith.constant 0 : index
    %2 = vector.load %arg3[%c0_3, %c0_4] : memref<1x32xf32, #tpu.memory_space<vmem>>, vector<1x32xf32>
    %3 = tpu.iota {dimensions = array<i32: 0>} : vector<8x32xi32>
    %c8_i32 = arith.constant 8 : i32
    %4 = arith.muli %arg0, %c8_i32 : i32
    %5 = vector.broadcast %4 : i32 to vector<8x32xi32>
    %6 = arith.addi %3, %5 : vector<8x32xi32>
    %7 = tpu.iota {dimensions = array<i32: 1>} : vector<8x32xi32>
    %8 = arith.cmpi eq, %6, %7 : vector<8x32xi32>
    %cst = arith.constant 1.000000e+00 : f32
    %cst_5 = arith.constant 0.000000e+00 : f32
    %9 = vector.broadcast %cst : f32 to vector<8x32xf32>
    %10 = vector.broadcast %cst_5 : f32 to vector<8x32xf32>
    %11 = arith.select %8, %9, %10 : vector<8x32xi1>, vector<8x32xf32>
    %cst_6 = arith.constant 0.000000e+00 : f32
    %12 = vector.broadcast %cst_6 : f32 to vector<8x1xf32>
    %13 = arith.cmpf ogt, %1, %12 : vector<8x1xf32>
    %14 = arith.extui %13 : vector<8x1xi1> to vector<8x1xi32>
    %15 = arith.sitofp %14 : vector<8x1xi32> to vector<8x1xf32>
    %16 = vector.broadcast %15 : vector<8x1xf32> to vector<8x32xf32>
    %17 = arith.mulf %11, %16 : vector<8x32xf32>
    %18 = vector.broadcast %1 : vector<8x1xf32> to vector<8x32xf32>
    %19 = arith.mulf %18, %0 : vector<8x32xf32>
    %20 = vector.broadcast %2 : vector<1x32xf32> to vector<8x32xf32>
    %21 = arith.mulf %19, %20 : vector<8x32xf32>
    %22 = arith.subf %17, %21 : vector<8x32xf32>
    %c0_7 = arith.constant 0 : index
    %c0_8 = arith.constant 0 : index
    %23 = vector.load %arg6[%c0_7, %c0_8] : memref<8x32xf32, #tpu.memory_space<vmem>>, vector<8x32xf32>
    tpu.vector_store %arg6[%c0_7, %c0_8], %22 {strides = array<i32>} : memref<8x32xf32, #tpu.memory_space<vmem>>, vector<8x32xf32>,
    %c0_9 = arith.constant 0 : index
    %c0_10 = arith.constant 0 : index
    %24 = vector.load %arg4[%c0_9, %c0_10] : memref<8x16xf32, #tpu.memory_space<vmem>>, vector<8x16xf32>
    %c0_11 = arith.constant 0 : index
    %c0_12 = arith.constant 0 : index
    %25 = vector.load %arg5[%c0_11, %c0_12] : memref<1x16xf32, #tpu.memory_space<vmem>>, vector<1x16xf32>
    %26 = vector.broadcast %25 : vector<1x16xf32> to vector<8x16xf32>
    %27 = arith.mulf %24, %26 : vector<8x16xf32>
    %cst_13 = arith.constant dense<0.000000e+00> : vector<8xf32>
    %28 = vector.multi_reduction <add>, %27, %cst_13 [1] : vector<8x16xf32> to vector<8xf32>
    %29 = vector.shape_cast %28 : vector<8xf32> to vector<8x1xf32>
    %c0_14 = arith.constant 0 : index
    %c0_15 = arith.constant 0 : index
    %30 = vector.load %arg7[%c0_14, %c0_15] : memref<8x1xf32, #tpu.memory_space<vmem>>, vector<8x1xf32>
    tpu.vector_store %arg7[%c0_14, %c0_15], %29 {strides = array<i32>} : memref<8x1xf32, #tpu.memory_space<vmem>>, vector<8x1xf32>,
    return
  }
  func.func @transform_0(%arg0: i32) -> (i32, i32) {
    %c0_i32 = arith.constant 0 : i32
    %c0_i32_0 = arith.constant 0 : i32
    return %arg0, %c0_i32 : i32, i32
  }
  func.func @transform_1(%arg0: i32) -> (i32, i32) {
    %c0_i32 = arith.constant 0 : i32
    %c0_i32_0 = arith.constant 0 : i32
    return %arg0, %c0_i32 : i32, i32
  }
  func.func @transform_2(%arg0: i32) -> (i32, i32) {
    %c0_i32 = arith.constant 0 : i32
    %c0_i32_0 = arith.constant 0 : i32
    %c0_i32_1 = arith.constant 0 : i32
    return %c0_i32, %c0_i32_0 : i32, i32
  }
  func.func @transform_3(%arg0: i32) -> (i32, i32) {
    %c0_i32 = arith.constant 0 : i32
    %c0_i32_0 = arith.constant 0 : i32
    return %arg0, %c0_i32 : i32, i32
  }
  func.func @transform_4(%arg0: i32) -> (i32, i32) {
    %c0_i32 = arith.constant 0 : i32
    %c0_i32_0 = arith.constant 0 : i32
    %c0_i32_1 = arith.constant 0 : i32
    return %c0_i32, %c0_i32_0 : i32, i32
  }
  func.func @transform_5(%arg0: i32) -> (i32, i32) {
    %c0_i32 = arith.constant 0 : i32
    %c0_i32_0 = arith.constant 0 : i32
    return %arg0, %c0_i32 : i32, i32
  }
  func.func @transform_6(%arg0: i32) -> (i32, i32) {
    %c0_i32 = arith.constant 0 : i32
    %c0_i32_0 = arith.constant 0 : i32
    return %arg0, %c0_i32 : i32, i32
  }
}

</mosaic_0001>

<bundles_post_ra>
// kernel: tpu_custom_call.1
= control target key start
LH: loop header
LB: loop body
LE: loop exit
PB: predicated region body
PF: predicated region fallthrough
CT: control target
= control target key end

     0   :  { %12 = vsyncpa [#allocation3], 0  ;;  %s734_s0 = inlined_call_operand.vmem [shape: f32[32,32], index: 0, kind: input, shape index: {}]   ;;  %s735_s1 = inlined_call_operand.vmem [shape: f32[32,1], index: 1, kind: input, shape index: {}]   ;;  %s736_s2 = inlined_call_operand.vmem [shape: f32[1,32], index: 2, kind: input, shape index: {}]   ;;  %s737_s3 = inlined_call_operand.vmem [shape: f32[32,16], index: 3, kind: input, shape index: {}]   ;;  %s738_s4 = inlined_call_operand.vmem [shape: f32[1,16], index: 4, kind: input, shape index: {}]   ;;  %s739_s5 = inlined_call_operand.hbm [shape: f32[32,32], index: 5, kind: output, shape index: {0}]   ;;  %s740_s6 = inlined_call_operand.vmem [shape: f32[32,1], index: 6, kind: output, shape index: {1}]  }
   0x1   :  { %14 = vsyncpa [#allocation3 + $0x1], 0  ;;  %s628_s21 = smov 0   ;;  %s630_s22 = smov 0  }
   0x2   :  { %s632_s23 = smov 0   ;;  %s634_s24 = smov 0  }
   0x3 LB: > { %s649_s25 = sadd.s32 4294967295, %s589_s24   ;;  %s468_s26 = sadd.s32 4294967294, %s589_s24   ;;  %s589_s24 = sphi %s634_s24, %s746_s24   ;;  %s585_s23 = sphi %s632_s23, %s745_s23   ;;  %s581_s22 = sphi %s630_s22, %s744_s22   ;;  %s577_s21 = sphi %s628_s21, %s743_s21  }
   0x4   : > { %s653_s27 = sadd.s32 1, %s589_s24   ;;  %s147_s28 = sadd.s32 1, %s585_s23 }
   0x5   : > { %s144_s29 = ssub.s32 %s589_s24, %s653_s27  ;;  %p157_p0 = scmp.ne.s32.totalorder %s585_s23, %s581_s22 }
   0x6   : > { %p145_p1 = scmp.eq.s32.totalorder %s144_s29, 0  ;;  %p158_p2 = scmp.eq.s32.totalorder %s649_s25, 3 }
   0x7   : > { %p163_p3 = scmp.ne.s32.totalorder %s581_s22, %s577_s21  ;;  %p164_p4 = scmp.eq.s32.totalorder %s468_s26, 3 }
   0x8   : > { %s664_s30 = scalar_select %p145_p1, %s585_s23, %s147_s28  }
   0x9   : > { %p666_p5 = por %p158_p2, %p157_p0  ;;  %p670_p6 = por %p164_p4, %p163_p3 }
   0xa   : > { %p471_p7 = scmp.ge.s32.totalorder %s589_s24, 1  ;;  %p235_p8 = scmp.lt.s32.totalorder %s589_s24, 5 }
   0xc   : > { %p236_p9 = pnand %p471_p7, %p235_p8 }
   0xd   : > { %p276_p10 = scmp.lt.s32.totalorder (!%p236_p9), %s649_s25, 3  ;;  %s477_s19 = sshll.u32 (!%p236_p9), %s649_s25, 3 }
   0xe   : > { %239 = sbr.rel (%p236_p9) target bundleno = 154 (0x9a), region = 40  ;;  %s267_s29 = sand.u32 (!%p236_p9), 1, %s581_s22  }
   0xf   : > { %s472_s13 = sshll.u32 (!%p236_p9), %s267_s29, 3  ;;  %s353_s17 = scalar_lea.hbm (!%p236_p9), %s739_s5, %s477_s19 }
  0x10   : > { %s339_s26 = scalar_lea.sflag (!%p236_p9), [#allocation3], %s267_s29 }
  0x13   : > { %v591_v0 = vmov 0   ;;  %s277_s9 = scalar_select %p276_p10, %s649_s25, 3  ;;  %v525_v1 = vld [vmem:[%s738_s4] ss:$0 sm:$0xff]  ;;  %vm332_vm0 = vcmask 130048   ;;  %v592_v6 = vmov 0.0   ;;  %v295_v8 = vlaneseq }
  0x14   : > { %524 = vset.pattern.permute.xlu0 %v591_v0  ;;  %v298_v10 = vstv %s477_s19  ;;  %vm336_vm2 = vcmask 7168   ;;  %v526_v16 = vld [vmem:[%s736_s2] ss:$0 sm:$0xff]  ;;  %vm324_vm4 = vcmask 261120  }
  0x15   : > { %s681_s12 = sshll.u32 %s277_s9, 3  ;;  %v296_v9 = vshrl.u32 %v295_v8, 7  ;;  %v301_v12 = vand.u32 127, %v295_v8 }
  0x16   : > { %s283_s15 = scalar_lea.vmem %s735_s1, %s681_s12  ;;  %s287_s18 = scalar_lea.vmem %s737_s3, %s681_s12 }
  0x17   : > { %v293_v2 = vld [vmem:[%s283_s15] sm:$0xff]  ;;  %s279_s28 = scalar_lea.vmem %s734_s0, %s681_s12  ;;  %v299_v11 = vadd.s32 %v298_v10, %v296_v9  ;;  %s291_s11 = scalar_lea.vmem %s740_s6, %s681_s12 }
  0x18   : > { %v326_v3 = vld [vmem:[%s287_s18] sm:$0xff]  ;;  %315 = vperm.xlu0 %524, %v293_v2   ;;  %vm304_vm1 = vcmp.gt.f32.partialorder %v293_v2, 0.0  ;;  %s269_s18 = scalar_lea.vmem [#allocation2], %s472_s13  ;;  %s357_s12 = sshll.u32 %s353_s17, 4  ;;  %s358_s12 = int_to_ptr.hbm [resolvable:$true] %s357_s12 }
  0x19   : > { %v331_v4 = vmul.f32 %v525_v1, %v326_v3  ;;  %v478_v7 = vsel %vm304_vm1, 1.0, %v592_v6  ;;  %v292_v14 = vld [vmem:[%s279_s28] sm:$0xff]  ;;  %vm302_vm3 = vcmp.eq.s32.totalorder %v299_v11, %v301_v12  ;;  %s355_s20 = sshll.u32 %s269_s18, 4  ;;  %s541_s28 = sshra.s32 %s358_s12, 4  ;;  %s356_s20 = int_to_ptr.vmem [resolvable:$true] %s355_s20  ;;  %s542_s28 = int_to_ptr.hbm [resolvable:$true] %s541_s28 }
  0x1a   : > { %v303_v18 = vsel %vm302_vm3, 1.0, %v592_v6  ;;  %s543_s9 = scalar_lea.hbm %s542_s28, 8  ;;  %p548_p0 = scmp.lt.s32.totalorder %s542_s28, %s739_s5 }
  0x1b   : > { %v333_v5 = vsel %vm332_vm0, %v331_v4, 0.0  ;;  %p544_p11 = scmp.ne.s32.totalorder %s542_s28, %s543_s9 }
  0x1c   : > { %334 = vadd.xlane.f32.xlu1 %v333_v5 }
  0x1d   : > { %p545_p12 = pnand %p544_p11, %p666_p5 }
  0x1f   : > { %p546_p13 = pneg %p545_p12 }
  0x20   : > { %309 = vperm.xlu0 %524, %v478_v7  }
  0x8a   : > { %v316_v13 = vpop.permute.xlu0 %315 }
  0x8b   : > { %v318_v17 = vmul.f32 %v316_v13, %v292_v14 }
  0x8d   : > { %v322_v20 = vmul.f32 %v526_v16, %v318_v17 }
  0x8f   : > { %v335_v15 = vpop.xlane.xlu1 %334 }
  0x90   : > { %337 = vst.msk [vmem:[%s291_s11] sm:$0xff] %vm336_vm2, %v335_v15  ;;  %s547_s11 = scalar_lea.hbm %s739_s5, 32 }
  0x91   : > { %p549_p1 = scmp.lt.s32.totalorder %s547_s11, %s543_s9 }
  0x92   : > { %v310_v19 = vpop.permute.xlu0 %309 }
  0x93   : > { %v312_v21 = vmul.f32 %v310_v19, %v303_v18  ;;  %p550_p2 = por %p549_p1, %p548_p0 }
  0x95   : > { %v323_v22 = vsub.f32 %v312_v21, %v322_v20  ;;  %p551_p3 = pnand %p550_p2, %p546_p13 }
  0x97   : > { %325 = vst.msk [vmem:[%s269_s18] sm:$0xff] %vm324_vm4, %v323_v22 }
  0x98   : > { %554 = shalt.err (!%p551_p3)
}
  0x99   : > { %483 = dma.vmem_to_hbm [thread:$0]  (%p666_p5), %s356_s20, 128, %s358_s12, %s339_s26  }
  0x9a PF: > { %p489_p4 = scmp.ge.s32.totalorder %s589_s24, 2  ;;  %s372_s29 = sand.u32 1, %s577_s21  }
  0x9b   : > { %s373_s14 = scalar_lea.sflag [#allocation3], %s372_s29 }
  0x9c   : > { %p486_p7 = pnand %p489_p4, %p670_p6 }
  0x9e   : > { %p487_p8 = pneg %p486_p7 }
  0xa0   : > { %572 = dma.done.wait (%p487_p8), %s373_s14, 128  }
  0xa1   : > { %574 = vsyncadd (%p487_p8), %s373_s14, 4294967168  ;;  %p17_p9 = scmp.ge.s32.totalorder %s653_s27, 6   ;;  %s743_s21 = smov %s581_s22 }
  0xa2   : > { %s744_s22 = smov %s585_s23  ;;  %s745_s23 = smov %s664_s30 }
  0xa3   : > { %s746_s24 = smov %s653_s27  ;;  %19 = sbr.rel (!%p17_p9) target bundleno = 3 (0x3), region = 93 }
  0xa8   :  { %386 = vsyncpa [#allocation3], 1 }
  0xa9   :  { %388 = vsyncpa [#allocation3 + $0x1], 1 }

</bundles_post_ra>
